<compile_context>
chip_gen: v6e
topology: v6e:2x2x1
jax: 0.10.0
libtpu: 0.0.40
codegen_flags: <defaults>
</compile_context>

<pallas_src>
import functools

import jax
import jax.numpy as jnp
from jax import lax
from jax.experimental import pallas as pl
from jax.experimental.pallas import tpu as pltpu


def _round_up(x, m):
    return ((x + m - 1) // m) * m


def _sublanes(dtype):
    # VMEM rows are padded to the packed sublane count: 8 for 4-byte dtypes,
    # 16 for 2-byte (bf16), 32 for 1-byte.
    return max(8, 32 // jnp.dtype(dtype).itemsize)


def _vmem_capacity_bytes():
    try:
        return int(pltpu.get_tpu_info().vmem_capacity_bytes)
    except Exception:
        return 64 * 1024 * 1024  # v7x-sized fallback; safe on every generation


# -----------------------------------------------------------------------------
# Fused kernel: streams tiles of both inputs over one "arbitrary" grid axis,
# accumulates G1 = x1 @ x1.T and G2 = x2 @ x2.T into VMEM scratch, and on the
# final step computes the scalar loss in-kernel.
# -----------------------------------------------------------------------------
def _diff_loss_kernel(x1_ref, x2_ref, out_ref, g1_ref, g2_ref, *,
                      d1, d2, tc, cpt, nsteps, inv_count):
    j = pl.program_id(0)
    tk = tc * cpt  # BlockSpec tile width (features per grid step)

    @pl.when(j == 0)
    def _init():
        g1_ref[...] = jnp.zeros_like(g1_ref)
        g2_ref[...] = jnp.zeros_like(g2_ref)

    def chunk_dot(x_ref, c_local, width):
        # (B, tc) chunk of the current VMEM tile; mask only a partial chunk.
        x = x_ref[:, c_local * tc:(c_local + 1) * tc]
        if width < tc:
            lane = lax.broadcasted_iota(jnp.int32, x.shape, 1)
            x = jnp.where(lane < width, x, jnp.zeros_like(x))
        # (B, tc) . (B, tc) contracting the (large) lane axis -> (B, B).
        # Native A @ B^T form; no transpose materialized, f32 MXU accumulate.
        return lax.dot_general(
            x, x, dimension_numbers=(((1,), (1,)), ((), ())),
            preferred_element_type=jnp.float32)

    def accumulate(x_ref, g_ref, d):
        steps_full = d // tk  # grid steps whose cpt chunks are all fully valid

        def full_step():
            acc = chunk_dot(x_ref, 0, tc)
            for c in range(1, cpt):
                acc = acc + chunk_dot(x_ref, c, tc)
            g_ref[...] += acc

        def tail_step():
            base = steps_full * tk  # first (global) feature column of this step
            acc = None
            for c in range(cpt):
                lo = base + c * tc
                if lo >= d:
                    break
                width = min(tc, d - lo)            # static per-chunk width
                part = chunk_dot(x_ref, c, width)
                acc = part if acc is None else acc + part
            g_ref[...] += acc

        if steps_full == nsteps:
            # d is a multiple of tk and spans every grid step: no gating at all.
            full_step()
        else:
            if steps_full > 0:
                @pl.when(j < steps_full)
                def _():
                    full_step()
            if d % tk != 0:
                @pl.when(j == steps_full)
                def _():
                    tail_step()
            # for j beyond this input's blocks: nothing (index_map is clamped,
            # so no extra DMA happens either).

    accumulate(x1_ref, g1_ref, d1)
    accumulate(x2_ref, g2_ref, d2)

    @pl.when(j == nsteps - 1)
    def _epilogue():
        g1 = g1_ref[...]
        g2 = g2_ref[...]
        b = g1.shape[0]
        row = lax.broadcasted_iota(jnp.int32, (b, b), 0)
        col = lax.broadcasted_iota(jnp.int32, (b, b), 1)
        diag = row == col
        g1d = jnp.where(diag, g1, 0.0)
        g2d = jnp.where(diag, g2, 0.0)
        # diag(G) extracted both as a column (row scales) and a row (column
        # scales), so no in-kernel transpose is needed.
        s1r = 1.0 / (jnp.sqrt(jnp.sum(g1d, axis=1, keepdims=True)) + 1e-6)  # (B,1)
        s1c = 1.0 / (jnp.sqrt(jnp.sum(g1d, axis=0, keepdims=True)) + 1e-6)  # (1,B)
        s2r = 1.0 / (jnp.sqrt(jnp.sum(g2d, axis=1, keepdims=True)) + 1e-6)
        s2c = 1.0 / (jnp.sqrt(jnp.sum(g2d, axis=0, keepdims=True)) + 1e-6)
        scaled = g1 * g2 * (s1r * s2r) * (s1c * s2c)
        total = jnp.sum(jnp.sum(scaled, axis=1, keepdims=True),
                        axis=0, keepdims=True)                              # (1,1)
        out_ref[...] = total * inv_count


def diff_loss(input1, input2):
    """Pallas implementation of DiffLoss.forward.  Returns an f32 scalar."""
    B = input1.shape[0]
    x1 = input1.reshape(B, -1)
    x2 = input2.reshape(B, -1)
    if not jnp.issubdtype(x1.dtype, jnp.floating):
        x1 = x1.astype(jnp.float32)
    if not jnp.issubdtype(x2.dtype, jnp.floating):
        x2 = x2.astype(jnp.float32)
    d1, d2 = x1.shape[1], x2.shape[1]
    dmax = max(d1, d2)

    i1 = jnp.dtype(x1.dtype).itemsize
    i2 = jnp.dtype(x2.dtype).itemsize
    rows1 = _round_up(B, _sublanes(x1.dtype))   # sublane-padded rows in VMEM
    rows2 = _round_up(B, _sublanes(x2.dtype))

    # Inner chunk width: biggest multiple of 128 keeping one (B, tc) chunk
    # value within ~32 vregs (128 KiB), capped at 2048 and at what D needs.
    bytes_per_lane_chunk = max(rows1 * i1, rows2 * i2)
    tc = max(128, min(2048,
                      (128 * 1024 // bytes_per_lane_chunk) // 128 * 128,
                      _round_up(dmax, 128)))

    # Per-generation VMEM budget for the double-buffered input tiles
    # (sublane-padded): 3/8 of physical VMEM = 24 MiB (v7x) / 48 MiB (v5e/v6e).
    vmem_cap = _vmem_capacity_bytes()
    input_budget = vmem_cap * 3 // 8
    tile_bytes_per_lane = 2 * (rows1 * i1 + rows2 * i2)   # x2 buffers, both inputs
    tk_cap = max(tc, (input_budget // tile_bytes_per_lane) // tc * tc)
    tk = max(tc, min(tk_cap, 32 * tc, _round_up(dmax, tc)))   # <=32 unrolled chunks
    cpt = tk // tc

    n1 = pl.cdiv(d1, tk)
    n2 = pl.cdiv(d2, tk)
    nsteps = max(n1, n2)

    # Scoped-VMEM limit: real buffer need + headroom, never below the default.
    needed = (tile_bytes_per_lane * tk
              + 2 * _round_up(B, 8) * _round_up(B, 128) * 4)
    vmem_limit = int(min(vmem_cap, max(32 * 1024 * 1024, needed + (8 << 20))))

    kernel = functools.partial(
        _diff_loss_kernel, d1=d1, d2=d2, tc=tc, cpt=cpt, nsteps=nsteps,
        inv_count=float(1.0 / (d1 * d2)))

    def _imap(nblocks):
        if nblocks == nsteps:
            return lambda j: (0, j)
        # Clamp once an input's blocks are exhausted: the block index stops
        # changing, so Pallas issues no further DMA for that input.
        return lambda j: (0, jnp.minimum(j, nblocks - 1))

    out = pl.pallas_call(
        kernel,
        out_shape=jax.ShapeDtypeStruct((1, 1), jnp.float32),
        grid_spec=pltpu.PrefetchScalarGridSpec(
            num_scalar_prefetch=0,
            grid=(nsteps,),
            in_specs=[pl.BlockSpec((B, tk), _imap(n1)),
                      pl.BlockSpec((B, tk), _imap(n2))],
            out_specs=pl.BlockSpec((1, 1), lambda j: (0, 0)),
            scratch_shapes=[pltpu.VMEM((B, B), jnp.float32),
                            pltpu.VMEM((B, B), jnp.float32)],
        ),
        compiler_params=pltpu.CompilerParams(
            dimension_semantics=("arbitrary",),
            vmem_limit_bytes=vmem_limit),
    )(x1, x2)
    return out[0, 0]


def _diff_loss_reference(input1, input2):
    B = input1.shape[0]
    x1 = input1.reshape(B, -1).astype(jnp.float32)
    x2 = input2.reshape(B, -1).astype(jnp.float32)
    n1 = jnp.sqrt(jnp.sum(x1 * x1, axis=1, keepdims=True))
    n2 = jnp.sqrt(jnp.sum(x2 * x2, axis=1, keepdims=True))
    x1n = x1 / (n1 + 1e-6)
    x2n = x2 / (n2 + 1e-6)
    return jnp.mean(jnp.square(x1n.T @ x2n))


if __name__ == "__main__":
    # DiffLoss has no learnable parameters; only inputs are needed.
    key = jax.random.PRNGKey(0)
    k1, k2, k3, k4, k5, k6 = jax.random.split(key, 6)

    # Primary: NCHW activations as produced by the encoders (B=2, C=4, 16x16).
    a = jax.random.normal(k1, (2, 4, 16, 16), dtype=jnp.float32)
    b = jax.random.normal(k2, (2, 4, 16, 16), dtype=jnp.float32)
    loss = jax.block_until_ready(jax.jit(diff_loss)(a, b))
    ref = _diff_loss_reference(a, b)
    assert jnp.allclose(loss, ref, rtol=1e-5, atol=1e-6), (loss, ref)

    # Mismatched, non-tile-multiple feature dims (masked-tail path).
    c = jax.random.normal(k3, (2, 3, 10, 10), dtype=jnp.float32)   # D1 = 300
    d = jax.random.normal(k4, (2, 5, 7, 7), dtype=jnp.float32)     # D2 = 245
    loss2 = jax.block_until_ready(jax.jit(diff_loss)(c, d))
    ref2 = _diff_loss_reference(c, d)
    assert jnp.allclose(loss2, ref2, rtol=1e-5, atol=1e-6), (loss2, ref2)

    # bf16 inputs (no in-kernel upcast; MXU accumulates in f32 natively).
    e = jax.random.normal(k5, (2, 4, 16, 16), dtype=jnp.bfloat16)
    f = jax.random.normal(k6, (2, 4, 16, 16), dtype=jnp.bfloat16)
    loss3 = jax.block_until_ready(jax.jit(diff_loss)(e, f))
    ref3 = _diff_loss_reference(e, f)
    assert jnp.allclose(loss3, ref3, rtol=2e-3, atol=1e-5), (loss3, ref3)

    # Larger, uneven dims: multi-step grid, clamped index map for the short
    # input, steady-state full steps and tail masking at different steps.
    g = jax.random.normal(k1, (2, 7, 100, 100), dtype=jnp.float32)  # D1 = 70000
    h = jax.random.normal(k2, (2, 3, 10, 10), dtype=jnp.float32)    # D2 = 300
    loss4 = jax.block_until_ready(jax.jit(diff_loss)(g, h))
    ref4 = _diff_loss_reference(g, h)
    assert jnp.allclose(loss4, ref4, rtol=1e-3, atol=1e-9), (loss4, ref4)

    print("KERNEL_OK")
</pallas_src>

<mosaic_0001>
module attributes {stable_mosaic.version = 11 : i64} {
  func.func @_diff_loss_kernel(%arg0: i32, %arg1: memref<2x1024xf32, #tpu.memory_space<vmem>>, %arg2: memref<2x1024xf32, #tpu.memory_space<vmem>>, %arg3: memref<1x1xf32, #tpu.memory_space<vmem>>, %arg4: memref<2x2xf32, #tpu.memory_space<vmem>>, %arg5: memref<2x2xf32, #tpu.memory_space<vmem>>) attributes {dimension_semantics = [#tpu.dimension_semantics<arbitrary>], iteration_bounds = array<i64: 1>, scalar_prefetch = 0 : i64, scratch_operands = 2 : i64, tpu.core_type = #tpu.core_type<tc>, window_params = [{transform_indices = @transform_0, window_bounds = array<i64: 2, 1024>}, {transform_indices = @transform_1, window_bounds = array<i64: 2, 1024>}, {pipeline_mode = #tpu.pipeline_mode<synchronous>, transform_indices = @transform_2, window_bounds = array<i64: 1, 1>}]} {
    %c0_i32 = arith.constant 0 : i32
    %0 = arith.cmpi eq, %arg0, %c0_i32 : i32
    %1 = arith.extui %0 : i1 to i32
    %c0_i32_0 = arith.constant 0 : i32
    %2 = arith.cmpi ne, %1, %c0_i32_0 : i32
    scf.if %2 {
      %cst_15 = arith.constant 0.000000e+00 : f32
      %16 = vector.broadcast %cst_15 : f32 to vector<2x2xf32>
      %c0_16 = arith.constant 0 : index
      %c0_17 = arith.constant 0 : index
      %17 = vector.load %arg4[%c0_16, %c0_17] : memref<2x2xf32, #tpu.memory_space<vmem>>, vector<2x2xf32>
      tpu.vector_store %arg4[%c0_16, %c0_17], %16 {strides = array<i32>} : memref<2x2xf32, #tpu.memory_space<vmem>>, vector<2x2xf32>,
      %cst_18 = arith.constant 0.000000e+00 : f32
      %18 = vector.broadcast %cst_18 : f32 to vector<2x2xf32>
      %c0_19 = arith.constant 0 : index
      %c0_20 = arith.constant 0 : index
      %19 = vector.load %arg5[%c0_19, %c0_20] : memref<2x2xf32, #tpu.memory_space<vmem>>, vector<2x2xf32>
      tpu.vector_store %arg5[%c0_19, %c0_20], %18 {strides = array<i32>} : memref<2x2xf32, #tpu.memory_space<vmem>>, vector<2x2xf32>,
    } else {
    }
    %c0 = arith.constant 0 : index
    %c0_1 = arith.constant 0 : index
    %3 = vector.load %arg1[%c0, %c0_1] : memref<2x1024xf32, #tpu.memory_space<vmem>>, vector<2x1024xf32>
    %cst = arith.constant dense<0.000000e+00> : vector<2x2xf32>
    %4 = tpu.matmul %3, %3, %cst {dimension_numbers = #tpu.dot_dimension_numbers<[1], [1], [0], [0], [0, 0, 1, 0], [], []>} : vector<2x1024xf32>, vector<2x1024xf32>, vector<2x2xf32> -> vector<2x2xf32>
    %c0_2 = arith.constant 0 : index
    %c0_3 = arith.constant 0 : index
    %5 = vector.load %arg4[%c0_2, %c0_3] : memref<2x2xf32, #tpu.memory_space<vmem>>, vector<2x2xf32>
    %6 = arith.addf %5, %4 : vector<2x2xf32>
    %c0_4 = arith.constant 0 : index
    %c0_5 = arith.constant 0 : index
    %7 = vector.load %arg4[%c0_4, %c0_5] : memref<2x2xf32, #tpu.memory_space<vmem>>, vector<2x2xf32>
    tpu.vector_store %arg4[%c0_4, %c0_5], %6 {strides = array<i32>} : memref<2x2xf32, #tpu.memory_space<vmem>>, vector<2x2xf32>,
    %c0_6 = arith.constant 0 : index
    %c0_7 = arith.constant 0 : index
    %8 = vector.load %arg2[%c0_6, %c0_7] : memref<2x1024xf32, #tpu.memory_space<vmem>>, vector<2x1024xf32>
    %cst_8 = arith.constant dense<0.000000e+00> : vector<2x2xf32>
    %9 = tpu.matmul %8, %8, %cst_8 {dimension_numbers = #tpu.dot_dimension_numbers<[1], [1], [0], [0], [0, 0, 1, 0], [], []>} : vector<2x1024xf32>, vector<2x1024xf32>, vector<2x2xf32> -> vector<2x2xf32>
    %c0_9 = arith.constant 0 : index
    %c0_10 = arith.constant 0 : index
    %10 = vector.load %arg5[%c0_9, %c0_10] : memref<2x2xf32, #tpu.memory_space<vmem>>, vector<2x2xf32>
    %11 = arith.addf %10, %9 : vector<2x2xf32>
    %c0_11 = arith.constant 0 : index
    %c0_12 = arith.constant 0 : index
    %12 = vector.load %arg5[%c0_11, %c0_12] : memref<2x2xf32, #tpu.memory_space<vmem>>, vector<2x2xf32>
    tpu.vector_store %arg5[%c0_11, %c0_12], %11 {strides = array<i32>} : memref<2x2xf32, #tpu.memory_space<vmem>>, vector<2x2xf32>,
    %c0_i32_13 = arith.constant 0 : i32
    %13 = arith.cmpi eq, %arg0, %c0_i32_13 : i32
    %14 = arith.extui %13 : i1 to i32
    %c0_i32_14 = arith.constant 0 : i32
    %15 = arith.cmpi ne, %14, %c0_i32_14 : i32
    scf.if %15 {
      %c0_15 = arith.constant 0 : index
      %c0_16 = arith.constant 0 : index
      %16 = vector.load %arg4[%c0_15, %c0_16] : memref<2x2xf32, #tpu.memory_space<vmem>>, vector<2x2xf32>
      %c0_17 = arith.constant 0 : index
      %c0_18 = arith.constant 0 : index
      %17 = vector.load %arg5[%c0_17, %c0_18] : memref<2x2xf32, #tpu.memory_space<vmem>>, vector<2x2xf32>
      %18 = tpu.iota {dimensions = array<i32: 0>} : vector<2x2xi32>
      %19 = tpu.iota {dimensions = array<i32: 1>} : vector<2x2xi32>
      %20 = arith.cmpi eq, %18, %19 : vector<2x2xi32>
      %cst_19 = arith.constant 0.000000e+00 : f32
      %21 = vector.broadcast %cst_19 : f32 to vector<2x2xf32>
      %22 = arith.select %20, %16, %21 : vector<2x2xi1>, vector<2x2xf32>
      %cst_20 = arith.constant 0.000000e+00 : f32
      %23 = vector.broadcast %cst_20 : f32 to vector<2x2xf32>
      %24 = arith.select %20, %17, %23 : vector<2x2xi1>, vector<2x2xf32>
      %cst_21 = arith.constant dense<0.000000e+00> : vector<2xf32>
      %25 = vector.multi_reduction <add>, %22, %cst_21 [1] : vector<2x2xf32> to vector<2xf32>
      %26 = vector.shape_cast %25 : vector<2xf32> to vector<2x1xf32>
      %27 = math.sqrt %26 : vector<2x1xf32>
      %cst_22 = arith.constant 9.99999997E-7 : f32
      %28 = vector.broadcast %cst_22 : f32 to vector<2x1xf32>
      %29 = arith.addf %27, %28 : vector<2x1xf32>
      %cst_23 = arith.constant 1.000000e+00 : f32
      %30 = vector.broadcast %cst_23 : f32 to vector<2x1xf32>
      %31 = arith.divf %30, %29 : vector<2x1xf32>
      %cst_24 = arith.constant dense<0.000000e+00> : vector<2xf32>
      %32 = vector.multi_reduction <add>, %22, %cst_24 [0] : vector<2x2xf32> to vector<2xf32>
      %33 = vector.shape_cast %32 : vector<2xf32> to vector<1x2xf32>
      %34 = math.sqrt %33 : vector<1x2xf32>
      %cst_25 = arith.constant 9.99999997E-7 : f32
      %35 = vector.broadcast %cst_25 : f32 to vector<1x2xf32>
      %36 = arith.addf %34, %35 : vector<1x2xf32>
      %cst_26 = arith.constant 1.000000e+00 : f32
      %37 = vector.broadcast %cst_26 : f32 to vector<1x2xf32>
      %38 = arith.divf %37, %36 : vector<1x2xf32>
      %cst_27 = arith.constant dense<0.000000e+00> : vector<2xf32>
      %39 = vector.multi_reduction <add>, %24, %cst_27 [1] : vector<2x2xf32> to vector<2xf32>
      %40 = vector.shape_cast %39 : vector<2xf32> to vector<2x1xf32>
      %41 = math.sqrt %40 : vector<2x1xf32>
      %cst_28 = arith.constant 9.99999997E-7 : f32
      %42 = vector.broadcast %cst_28 : f32 to vector<2x1xf32>
      %43 = arith.addf %41, %42 : vector<2x1xf32>
      %cst_29 = arith.constant 1.000000e+00 : f32
      %44 = vector.broadcast %cst_29 : f32 to vector<2x1xf32>
      %45 = arith.divf %44, %43 : vector<2x1xf32>
      %cst_30 = arith.constant dense<0.000000e+00> : vector<2xf32>
      %46 = vector.multi_reduction <add>, %24, %cst_30 [0] : vector<2x2xf32> to vector<2xf32>
      %47 = vector.shape_cast %46 : vector<2xf32> to vector<1x2xf32>
      %48 = math.sqrt %47 : vector<1x2xf32>
      %cst_31 = arith.constant 9.99999997E-7 : f32
      %49 = vector.broadcast %cst_31 : f32 to vector<1x2xf32>
      %50 = arith.addf %48, %49 : vector<1x2xf32>
      %cst_32 = arith.constant 1.000000e+00 : f32
      %51 = vector.broadcast %cst_32 : f32 to vector<1x2xf32>
      %52 = arith.divf %51, %50 : vector<1x2xf32>
      %53 = arith.mulf %16, %17 : vector<2x2xf32>
      %54 = arith.mulf %31, %45 : vector<2x1xf32>
      %55 = vector.broadcast %54 : vector<2x1xf32> to vector<2x2xf32>
      %56 = arith.mulf %53, %55 : vector<2x2xf32>
      %57 = arith.mulf %38, %52 : vector<1x2xf32>
      %58 = vector.broadcast %57 : vector<1x2xf32> to vector<2x2xf32>
      %59 = arith.mulf %56, %58 : vector<2x2xf32>
      %cst_33 = arith.constant dense<0.000000e+00> : vector<2xf32>
      %60 = vector.multi_reduction <add>, %59, %cst_33 [1] : vector<2x2xf32> to vector<2xf32>
      %61 = vector.shape_cast %60 : vector<2xf32> to vector<2x1xf32>
      %cst_34 = arith.constant dense<0.000000e+00> : vector<1xf32>
      %62 = vector.multi_reduction <add>, %61, %cst_34 [0] : vector<2x1xf32> to vector<1xf32>
      %63 = vector.shape_cast %62 : vector<1xf32> to vector<1x1xf32>
      %cst_35 = arith.constant 9.53674316E-7 : f32
      %64 = vector.broadcast %cst_35 : f32 to vector<1x1xf32>
      %65 = arith.mulf %63, %64 : vector<1x1xf32>
      %c0_36 = arith.constant 0 : index
      %c0_37 = arith.constant 0 : index
      %66 = vector.load %arg3[%c0_36, %c0_37] : memref<1x1xf32, #tpu.memory_space<vmem>>, vector<1x1xf32>
      tpu.vector_store %arg3[%c0_36, %c0_37], %65 {strides = array<i32>} : memref<1x1xf32, #tpu.memory_space<vmem>>, vector<1x1xf32>,
    } else {
    }
    return
  }
  func.func @transform_0(%arg0: i32) -> (i32, i32) {
    %c0_i32 = arith.constant 0 : i32
    %c0_i32_0 = arith.constant 0 : i32
    return %c0_i32, %arg0 : i32, i32
  }
  func.func @transform_1(%arg0: i32) -> (i32, i32) {
    %c0_i32 = arith.constant 0 : i32
    %c0_i32_0 = arith.constant 0 : i32
    return %c0_i32, %arg0 : i32, i32
  }
  func.func @transform_2(%arg0: i32) -> (i32, i32) {
    %c0_i32 = arith.constant 0 : i32
    %c0_i32_0 = arith.constant 0 : i32
    %c0_i32_1 = arith.constant 0 : i32
    return %c0_i32, %c0_i32_0 : i32, i32
  }
}

</mosaic_0001>

<bundles_post_ra>
// kernel: diff_loss.1
= control target key start
LH: loop header
LB: loop body
LE: loop exit
PB: predicated region body
PF: predicated region fallthrough
CT: control target
= control target key end

     0   :  { %v27_v1 = vlaneseq  ;;  %v826_v3 = vmov 1983009808   ;;  %s872_s0 = inlined_call_operand.vmem [shape: f32[2,1024], index: 0, kind: input, shape index: {}]   ;;  %s873_s1 = inlined_call_operand.vmem [shape: f32[2,1024], index: 1, kind: input, shape index: {}]   ;;  %s874_s2 = inlined_call_operand.hbm [shape: f32[1,1], index: 2, kind: output, shape index: {}]  }
   0x1   :  { %v19_v0 = vld [vmem:[%s872_s0] sm:$0xff]  ;;  %v20_v2 = vld [vmem:[%s872_s0 + $0x8] sm:$0xff]  ;;  %v25_v4 = vunpack.c.l.s4 %v826_v3 }
   0x2   :  { %7 = vsyncpa [#allocation5], 0  ;;  %v851_v5 = vshrl.u32 %v27_v1, 7  ;;  %v23_v7 = vcombine.high %v19_v0, %v19_v0  ;;  %v40_v8 = vcombine.high %v20_v2, %v20_v2  ;;  %v349_v9 = vld [vmem:[%s873_s1] sm:$0xff]  ;;  %v350_v12 = vld [vmem:[%s873_s1 + $0x8] sm:$0xff]  ;;  %vm16_vm0 = vcmask 9216  }
   0x3   :  { %v26_v6 = vunpack.c.0.s8 %v25_v4  ;;  %v353_v11 = vcombine.high %v349_v9, %v349_v9  ;;  %v370_v19 = vcombine.high %v350_v12, %v350_v12  ;;  %v827_v30 = vmov 0.0   ;;  %s828_s0 = smov [#allocation4]  }
   0x4   :  { %17 = vst.msk [vmem:[#allocation2] sm:$0x3] %vm16_vm0, %v827_v30  ;;  %18 = vst.msk [vmem:[#allocation3] sm:$0x3] %vm16_vm0, %v827_v30  ;;  %v686_v51 = vand.u32 127, %v27_v1  ;;  %vm756_vm10 = vcmask 1041408  }
   0x5   :  { %v29_v10 = vsub.s32 %v26_v6, %v851_v5  ;;  %s773_s1 = sshll.u32 %s828_s0, 4  ;;  %vm765_vm11 = vcmask 0   ;;  %s774_s1 = int_to_ptr.vmem [resolvable:$true] %s773_s1 }
   0x6   :  { %vm687_vm1 = vcmp.eq.s32.totalorder %v851_v5, %v686_v51  ;;  %s804_s17 = scalar_lea.vmem %s774_s1, 16  ;;  %s808_s18 = scalar_lea.vmem %s774_s1, 32 }
   0x7   :  { %v30_v13 = vrot.slane %v19_v0, %v29_v10  ;;  %v37_v14 = vrot.slane %v23_v7, %v29_v10  ;;  %v47_v15 = vrot.slane %v20_v2, %v29_v10  ;;  %v54_v16 = vrot.slane %v40_v8, %v29_v10  ;;  %p805_p0 = scmp.ne.s32.totalorder %s774_s1, %s804_s17  ;;  %p809_p1 = scmp.lt.s32.totalorder %s774_s1, %s774_s1 }
   0x8   :  { %v360_v22 = vrot.slane %v349_v9, %v29_v10  ;;  %v367_v23 = vrot.slane %v353_v11, %v29_v10  ;;  %v377_v24 = vrot.slane %v350_v12, %v29_v10  ;;  %v384_v27 = vrot.slane %v370_v19, %v29_v10  ;;  %p810_p2 = scmp.lt.s32.totalorder %s808_s18, %s804_s17 }
   0x9   :  { %v38_v17 = vcombine.high %v30_v13, %v30_v13  ;;  %v39_v18 = vcombine.high %v37_v14, %v37_v14  ;;  %v55_v20 = vcombine.high %v47_v15, %v47_v15  ;;  %v56_v21 = vcombine.high %v54_v16, %v54_v16 }
   0xa   :  { %v368_v25 = vcombine.high %v360_v22, %v360_v22  ;;  %v369_v26 = vcombine.high %v367_v23, %v367_v23  ;;  %v385_v28 = vcombine.high %v377_v24, %v377_v24  ;;  %v386_v29 = vcombine.high %v384_v27, %v384_v27  ;;  %p811_p3 = por %p810_p2, %p809_p1 }
   0xb   :  { %95 = vmatprep.subr.mxu0 %v38_v17  ;;  %165 = vmatprep.subr.mxu1 %v39_v18  ;;  %v345_v39 = vld [vmem:[#allocation2] sm:$0x3]  ;;  %v675_v53 = vld [vmem:[#allocation3] sm:$0x3] }
   0xc   :  { %96 = vmatpush1.xpose.msra.mxu0 %v30_v13  ;;  %166 = vmatpush1.xpose.msra.mxu1 %v37_v14  ;;  %p812_p4 = pnand %p811_p3, %p805_p0 }
   0xd   :  { %129 = vmatprep.mubr.f32.mxu0 %v38_v17  ;;  %199 = vmatprep.mubr.f32.mxu1 %v39_v18 }
   0xe   :  { %235 = vmatprep.subr.mxu0 %v55_v20  ;;  %305 = vmatprep.subr.mxu1 %v56_v21 }
   0xf   :  { %130 = vmatmul.mubr.f32.vlgmr.msra.gmra.mxu0 %v30_v13  ;;  %200 = vmatmul.mubr.f32.vlgmr.msra.gmra.mxu1 %v37_v14 }
  0x10   :  { %236 = vmatpush1.xpose.msra.mxu0 %v47_v15  ;;  %306 = vmatpush1.xpose.msra.mxu1 %v54_v16 }
  0x11   :  { %269 = vmatprep.mubr.f32.mxu0 %v55_v20  ;;  %339 = vmatprep.mubr.f32.mxu1 %v56_v21 }
  0x12   :  { %425 = vmatprep.subr.mxu0 %v368_v25  ;;  %495 = vmatprep.subr.mxu1 %v369_v26 }
  0x13   :  { %270 = vmatmul.mubr.f32.vlgmr.msra.gmra.mxu0 %v47_v15  ;;  %340 = vmatmul.mubr.f32.vlgmr.msra.gmra.mxu1 %v54_v16 }
  0x14   :  { %426 = vmatpush1.xpose.msra.mxu0 %v360_v22  ;;  %496 = vmatpush1.xpose.msra.mxu1 %v367_v23 }
  0x15   :  { %459 = vmatprep.mubr.f32.mxu0 %v368_v25  ;;  %529 = vmatprep.mubr.f32.mxu1 %v369_v26 }
  0x16   :  { %565 = vmatprep.subr.mxu0 %v385_v28  ;;  %635 = vmatprep.subr.mxu1 %v386_v29 }
  0x17   :  { %460 = vmatmul.mubr.f32.vlgmr.msra.gmra.mxu0 %v360_v22  ;;  %530 = vmatmul.mubr.f32.vlgmr.msra.gmra.mxu1 %v367_v23 }
  0x18   :  { %566 = vmatpush1.xpose.msra.mxu0 %v377_v24  ;;  %636 = vmatpush1.xpose.msra.mxu1 %v384_v27 }
  0x19   :  { %599 = vmatprep.mubr.f32.mxu0 %v385_v28  ;;  %669 = vmatprep.mubr.f32.mxu1 %v386_v29 }
  0x1b   :  { %600 = vmatmul.mubr.f32.vlgmr.msra.gmra.mxu0 %v377_v24  ;;  %670 = vmatmul.mubr.f32.vlgmr.msra.gmra.mxu1 %v384_v27 }
  0xcf   :  { %v131_v31 = vpop.f32.mrf.mxu0  ;;  %v201_v32 = vpop.f32.mrf.mxu1 }
  0xd0   :  { %v202_v35 = vadd.f32 %v201_v32, %v131_v31 }
  0xd1   :  { %v133_v33 = vpop.f32.mrf.mxu0  ;;  %v203_v34 = vpop.f32.mrf.mxu1 }
  0xd3   :  { %v271_v36 = vpop.f32.mrf.mxu0  ;;  %v341_v37 = vpop.f32.mrf.mxu1 }
  0xd4   :  { %v272_v38 = vadd.f32 %v271_v36, %v202_v35 }
  0xd5   :  { %v273_v40 = vpop.f32.mrf.mxu0  ;;  %v343_v41 = vpop.f32.mrf.mxu1 }
  0xd6   :  { %v342_v42 = vadd.f32 %v341_v37, %v272_v38 }
  0xd7   :  { %v461_v43 = vpop.f32.mrf.mxu0  ;;  %v531_v44 = vpop.f32.mrf.mxu1 }
  0xd8   :  { %v346_v45 = vadd.f32 %v345_v39, %v342_v42  ;;  %v532_v48 = vadd.f32 %v531_v44, %v461_v43 }
  0xd9   :  { %v463_v46 = vpop.f32.mrf.mxu0  ;;  %v533_v47 = vpop.f32.mrf.mxu1 }
  0xda   :  { %348 = vst.msk [vmem:[#allocation2] sm:$0x3] %vm16_vm0, %v346_v45 }
  0xdb   :  { %v601_v49 = vpop.f32.mrf.mxu0  ;;  %v671_v50 = vpop.f32.mrf.mxu1 }
  0xdc   :  { %v602_v52 = vadd.f32 %v601_v49, %v532_v48 }
  0xdd   :  { %v603_v54 = vpop.f32.mrf.mxu0  ;;  %v673_v55 = vpop.f32.mrf.mxu1 }
  0xde   :  { %v672_v56 = vadd.f32 %v671_v50, %v602_v52 }
  0xe0   :  { %v676_v57 = vadd.f32 %v675_v53, %v672_v56 }
  0xe1   :  { %v681_v58 = vld [vmem:[#allocation2] sm:$0x3] }
  0xe2   :  { %677 = vst.msk [vmem:[#allocation3] sm:$0x3] %vm16_vm0, %v676_v57  ;;  %v688_v59 = vsel %vm687_vm1, %v681_v58, 0.0 }
  0xe3   :  { %v690_v60 = vsel %vm16_vm0, %v688_v59, 0.0 }
  0xe4   :  { %691 = vadd.xlane.f32.xlu0 %v690_v60  ;;  %v703_v61 = vrot.slane %v690_v60, 4 }
  0xe6   :  { %v704_v62 = vadd.f32 %v703_v61, %v690_v60 }
  0xe8   :  { %v705_v63 = vrot.slane %v704_v62, 2 }
  0xe9   :  { %v682_v0 = vld [vmem:[#allocation3] sm:$0x3] }
  0xea   :  { %v706_v1 = vadd.f32 %v705_v63, %v704_v62  ;;  %v689_v2 = vsel %vm687_vm1, %v682_v0, 0.0  ;;  %v748_v3 = vmul.f32 %v682_v0, %v681_v58 }
  0xeb   :  { %v719_v4 = vsel %vm16_vm0, %v689_v2, 0.0 }
  0xec   :  { %v707_v6 = vrot.slane %v706_v1, 1  ;;  %v732_v7 = vrot.slane %v719_v4, 4  ;;  %720 = vadd.xlane.f32.xlu0 %v719_v4 }
  0xee   :  { %v708_v5 = vadd.f32 %v707_v6, %v706_v1  ;;  %v733_v8 = vadd.f32 %v732_v7, %v719_v4 }
  0xf0   :  { %788 = vrsqrt.f32 %v708_v5  ;;  %v734_v9 = vrot.slane %v733_v8, 2  ;;  %vm711_vm2 = vcmp.eq.f32.partialorder %v708_v5, inf  ;;  %v714_v16 = vand.u32 2147483648, %v708_v5 }
  0xf1   :  { %vm713_vm3 = vcmp.eq.f32.partialorder %v708_v5, 0.0 }
  0xf2   :  { %v735_v10 = vadd.f32 %v734_v9, %v733_v8 }
  0xf4   :  { %v736_v11 = vrot.slane %v735_v10, 1 }
  0xf6   :  { %v737_v12 = vadd.f32 %v736_v11, %v735_v10 }
  0xf8   :  { %790 = vrsqrt.f32 %v737_v12  ;;  %vm740_vm4 = vcmp.eq.f32.partialorder %v737_v12, inf  ;;  %v743_v21 = vand.u32 2147483648, %v737_v12  ;;  %vm742_vm5 = vcmp.eq.f32.partialorder %v737_v12, 0.0 }
  0xfd   :  { %v789_v13 = vpop.eup %788 }
  0xfe   :  { %v710_v14 = vmul.f32 %v789_v13, %v708_v5 }
 0x100   :  { %v712_v15 = vsel %vm711_vm2, %v708_v5, %v710_v14 }
 0x101   :  { %v715_v17 = vsel %vm713_vm3, %v714_v16, %v712_v15 }
 0x102   :  { %v716_v20 = vadd.f32 1e-06, %v715_v17 }
 0x104   :  { %792 = vrcp.f32 %v716_v20 }
 0x105   :  { %v791_v18 = vpop.eup %790 }
 0x106   :  { %v739_v19 = vmul.f32 %v791_v18, %v737_v12 }
 0x108   :  { %v741_v22 = vsel %vm740_vm4, %v737_v12, %v739_v19 }
 0x109   :  { %v744_v23 = vsel %vm742_vm5, %v743_v21, %v741_v22 }
 0x10a   :  { %v745_v24 = vadd.f32 1e-06, %v744_v23 }
 0x10c   :  { %794 = vrcp.f32 %v745_v24 }
 0x111   :  { %v793_v25 = vpop.eup %792 }
 0x119   :  { %v795_v26 = vpop.eup %794 }
 0x11a   :  { %v751_v27 = vmul.f32 %v795_v26, %v793_v25 }
 0x16d   :  { %v692_v28 = vpop.xlane.xlu0 %691 }
 0x16e   :  { %796 = vrsqrt.f32 %v692_v28  ;;  %vm695_vm6 = vcmp.eq.f32.partialorder %v692_v28, inf  ;;  %v698_v33 = vand.u32 2147483648, %v692_v28  ;;  %vm697_vm7 = vcmp.eq.f32.partialorder %v692_v28, 0.0 }
 0x175   :  { %v721_v29 = vpop.xlane.xlu0 %720 }
 0x176   :  { %798 = vrsqrt.f32 %v721_v29  ;;  %vm724_vm8 = vcmp.eq.f32.partialorder %v721_v29, inf  ;;  %v727_v38 = vand.u32 2147483648, %v721_v29  ;;  %vm726_vm9 = vcmp.eq.f32.partialorder %v721_v29, 0.0 }
 0x17b   :  { %v797_v30 = vpop.eup %796 }
 0x17c   :  { %v694_v31 = vmul.f32 %v797_v30, %v692_v28 }
 0x17e   :  { %v696_v32 = vsel %vm695_vm6, %v692_v28, %v694_v31 }
 0x17f   :  { %v699_v34 = vsel %vm697_vm7, %v698_v33, %v696_v32 }
 0x180   :  { %v700_v37 = vadd.f32 1e-06, %v699_v34 }
 0x182   :  { %800 = vrcp.f32 %v700_v37 }
 0x183   :  { %v799_v35 = vpop.eup %798 }
 0x184   :  { %v723_v36 = vmul.f32 %v799_v35, %v721_v29 }
 0x186   :  { %v725_v39 = vsel %vm724_vm8, %v721_v29, %v723_v36 }
 0x187   :  { %v728_v40 = vsel %vm726_vm9, %v727_v38, %v725_v39 }
 0x188   :  { %v729_v41 = vadd.f32 1e-06, %v728_v40 }
 0x18a   :  { %802 = vrcp.f32 %v729_v41 }
 0x18f   :  { %v801_v42 = vpop.eup %800 }
 0x197   :  { %v803_v43 = vpop.eup %802 }
 0x198   :  { %v749_v44 = vmul.f32 %v803_v43, %v801_v42 }
 0x19a   :  { %v750_v45 = vmul.f32 %v749_v44, %v748_v3 }
 0x19c   :  { %v752_v46 = vmul.f32 %v751_v27, %v750_v45 }
 0x19e   :  { %v753_v47 = vsel %vm16_vm0, %v752_v46, 0.0 }
 0x19f   :  { %754 = vadd.xlane.f32.xlu1 %v753_v47 }
 0x228   :  { %v755_v48 = vpop.xlane.xlu1 %754 }
 0x229   :  { %v757_v49 = vsel %vm756_vm10, %v755_v48, 0.0 }
 0x22a   :  { %v758_v50 = vrot.slane %v757_v49, 4 }
 0x22c   :  { %v759_v51 = vadd.f32 %v758_v50, %v757_v49 }
 0x22e   :  { %v760_v52 = vrot.slane %v759_v51, 2 }
 0x230   :  { %v761_v53 = vadd.f32 %v760_v52, %v759_v51 }
 0x232   :  { %v762_v54 = vrot.slane %v761_v53, 1 }
 0x234   :  { %v763_v55 = vadd.f32 %v762_v54, %v761_v53 }
 0x236   :  { %v764_v56 = vmul.f32 9.536743e-07, %v763_v55 }
 0x238   :  { %766 = vst.msk [vmem:[#allocation4] sm:$0x1] %vm765_vm11, %v764_v56 }
 0x239   :  { %815 = shalt.err (!%p812_p4)
}
 0x23a   :  { %776 = dma.vmem_to_hbm [thread:$0]  %s774_s1, 16, %s874_s2, [#allocation5]  }
 0x23b   :  { %824 = dma.done.wait [#allocation5], 16  }
 0x23c   :  { %825 = vsyncadd [#allocation5], 4294967280 }
 0x23d   :  { %780 = vsyncpa [#allocation5], 1 }

</bundles_post_ra>
